<compile_context>
chip_gen: v5e
topology: v5e:2x2
jax: 0.10.0
libtpu: 0.0.40
codegen_flags: <defaults>
</compile_context>

<pallas_src>
import functools

import jax
import jax.numpy as jnp
from jax.experimental import pallas as pl
from jax.experimental.pallas import tpu as pltpu


def _round_up(x, m):
    return (x + m - 1) // m * m


def _label_smoothing_kernel(pred_ref, tgt_ref, out_ref, *, classes, smoothing,
                            tile_n, n_total):
    confidence = 1.0 - smoothing
    # Guard the classes == 1 degenerate case (reference would divide by zero).
    off_value = (smoothing / (classes - 1)) if classes > 1 else 0.0
    sum_w = off_value * (classes - 1) + confidence      # == 1.0 for classes > 1

    x = pred_ref[...].astype(jnp.float32)               # (TN, C), real C
    tn, c = x.shape

    # Stable log-softmax pieces; logp itself is never materialized.
    m = jnp.max(x, axis=-1, keepdims=True)              # (TN, 1)
    z = x - m                                           # (TN, C)
    lse = jnp.log(jnp.sum(jnp.exp(z), axis=-1, keepdims=True))   # (TN, 1)

    # Smoothed one-hot weights folded into ONE weighted row-sum:
    #   per_row = -sum_j w_j * logp_j = sum_w * lse - sum_j w_j * z_j
    col_ids = jax.lax.broadcasted_iota(jnp.int32, (tn, c), 1)
    tgt = tgt_ref[...]                                   # (TN, 1) int32
    w = jnp.where(col_ids == tgt,
                  jnp.float32(confidence), jnp.float32(off_value))
    s = jnp.sum(w * z, axis=-1, keepdims=True)           # (TN, 1)

    per_row = jnp.float32(sum_w) * lse - s               # (TN, 1)

    # Mask rows past the real batch size (ragged last tile).  OOB rows hold
    # uninitialized data and may evaluate to NaN/Inf above; jnp.where still
    # returns exactly 0.0 for them.
    row_ids = (pl.program_id(0) * tile_n
               + jax.lax.broadcasted_iota(jnp.int32, (tn, 1), 0))
    per_row = jnp.where(row_ids < n_total, per_row, 0.0)

    partial = jnp.sum(per_row)
    # Lane-dense per-block output tile; only [0, 0, 0] is consumed in JAX.
    out_ref[...] = jnp.full((1, 8, 128), partial, dtype=jnp.float32)


def label_smoothing_loss(pred, target, *, classes, smoothing=0.0, tile_n=None):
    """pred: (N, classes) float (f32 or bf16); target: (N,) int.

    Returns scalar float32 loss (mean over batch of smoothed cross-entropy),
    matching LabelSmoothingLoss.forward.
    """
    n, c = pred.shape
    assert c == classes

    itemsize = jnp.dtype(pred.dtype).itemsize
    row_mult = 16 if itemsize < 4 else 8        # bf16 packs 16 rows / sublane grp
    # Physical lane width of one VMEM row (for budgeting only; the BlockSpec
    # uses the real C, so HBM traffic is never amplified).
    c_lane = max(128, _round_up(c, 128))

    # Chip-aware VMEM limit.  Conservative fallback fits v7x (64 MiB physical).
    try:
        vmem_cap = pltpu.get_tpu_info().vmem_capacity_bytes
    except Exception:  # pragma: no cover - env without TPU info
        vmem_cap = 64 * 1024 * 1024
    if vmem_cap >= 100 * 1024 * 1024:           # v5e / v6e: 128 MiB physical
        vmem_limit = 96 * 1024 * 1024
    else:                                       # v7x: 64 MiB physical per TC
        vmem_limit = 48 * 1024 * 1024

    if tile_n is None:
        # Per-row VMEM cost: 2x double-buffered input tile + ~4 f32
        # intermediates (upcast x, z, exp(z), weights) at physical lane width.
        bytes_per_row = c_lane * (2 * itemsize + 4 * 4)
        budget = vmem_limit // 2
        tile_n = max(row_mult, budget // bytes_per_row)
    tile_n = max(row_mult, _round_up(tile_n, row_mult))
    # Keep >= 2 grid blocks when possible so the "parallel" batch axis can be
    # split across both TensorCores on v7x.
    if n > 2 * row_mult:
        tile_n = min(tile_n, _round_up(pl.cdiv(n, 2), row_mult))
    tile_n = min(tile_n, _round_up(n, row_mult))

    num_blocks = pl.cdiv(n, tile_n)
    tgt2d = target.astype(jnp.int32).reshape(n, 1)

    kernel = functools.partial(
        _label_smoothing_kernel,
        classes=classes, smoothing=smoothing, tile_n=tile_n, n_total=n,
    )

    partials = pl.pallas_call(
        kernel,
        out_shape=jax.ShapeDtypeStruct((num_blocks, 8, 128), jnp.float32),
        grid=(num_blocks,),
        in_specs=[
            # Last dim equals the full array dim (real C) -> no HBM padding.
            pl.BlockSpec((tile_n, c), lambda i: (i, 0)),
            pl.BlockSpec((tile_n, 1), lambda i: (i, 0)),
        ],
        out_specs=pl.BlockSpec((1, 8, 128), lambda i: (i, 0, 0)),
        compiler_params=pltpu.CompilerParams(
            dimension_semantics=("parallel",),
            vmem_limit_bytes=vmem_limit,
        ),
    )(pred, tgt2d)

    # Tiny finalize in JAX: sum per-block partials, divide by the global N.
    return jnp.sum(partials[:, 0, 0]) / jnp.float32(n)


def _reference(pred, target, *, classes, smoothing):
    confidence = 1.0 - smoothing
    logp = jax.nn.log_softmax(pred.astype(jnp.float32), axis=-1)
    off = smoothing / (classes - 1) if classes > 1 else 0.0
    true_dist = jnp.full_like(logp, off)
    onehot = jax.nn.one_hot(target, classes, dtype=jnp.bool_)
    true_dist = jnp.where(onehot, confidence, true_dist)
    return jnp.mean(jnp.sum(-true_dist * logp, axis=-1))


if __name__ == "__main__":
    key = jax.random.PRNGKey(0)
    kp, kt = jax.random.split(key)
    smoothing = 0.1

    # Case 1: tiny f32 inputs, single tile (auto tile size), C not lane-aligned.
    N1, C1 = 8, 5
    pred1 = jax.random.normal(kp, (N1, C1), dtype=jnp.float32)
    tgt1 = jax.random.randint(kt, (N1,), 0, C1, dtype=jnp.int32)
    loss1 = jax.block_until_ready(
        label_smoothing_loss(pred1, tgt1, classes=C1, smoothing=smoothing))
    ref1 = _reference(pred1, tgt1, classes=C1, smoothing=smoothing)
    assert jnp.allclose(loss1, ref1, atol=1e-5, rtol=1e-5), (loss1, ref1)

    # Case 2: bf16 input, multi-block grid with a ragged last tile
    # (exercises row masking, unpadded ragged blocks, parallel batch grid).
    N2, C2 = 20, 5
    kp2, kt2 = jax.random.split(kt)
    pred2 = jax.random.normal(kp2, (N2, C2), dtype=jnp.bfloat16)
    tgt2 = jax.random.randint(kt2, (N2,), 0, C2, dtype=jnp.int32)
    loss2 = jax.block_until_ready(
        label_smoothing_loss(pred2, tgt2, classes=C2, smoothing=smoothing,
                             tile_n=16))
    ref2 = _reference(pred2, tgt2, classes=C2, smoothing=smoothing)
    assert jnp.allclose(loss2, ref2, atol=1e-4, rtol=1e-4), (loss2, ref2)

    print("KERNEL_OK")
</pallas_src>

<mosaic_0001>
module attributes {stable_mosaic.version = 11 : i64} {
  func.func @_label_smoothing_kernel(%arg0: i32, %arg1: memref<8x5xf32, #tpu.memory_space<vmem>>, %arg2: memref<8x1xi32, #tpu.memory_space<vmem>>, %arg3: memref<1x8x128xf32, #tpu.memory_space<vmem>>) attributes {dimension_semantics = [#tpu.dimension_semantics<parallel>], iteration_bounds = array<i64: 1>, scalar_prefetch = 0 : i64, scratch_operands = 0 : i64, tpu.core_type = #tpu.core_type<tc>, window_params = [{transform_indices = @transform_0, window_bounds = array<i64: 8, 5>}, {transform_indices = @transform_1, window_bounds = array<i64: 8, 1>}, {transform_indices = @transform_2, window_bounds = array<i64: 1, 8, 128>}]} {
    %c0 = arith.constant 0 : index
    %c0_0 = arith.constant 0 : index
    %0 = vector.load %arg1[%c0, %c0_0] : memref<8x5xf32, #tpu.memory_space<vmem>>, vector<8x5xf32>
    %cst = arith.constant dense<0xFF800000> : vector<8xf32>
    %1 = vector.multi_reduction <maximumf>, %0, %cst [1] : vector<8x5xf32> to vector<8xf32>
    %2 = vector.shape_cast %1 : vector<8xf32> to vector<8x1xf32>
    %3 = vector.broadcast %2 : vector<8x1xf32> to vector<8x5xf32>
    %4 = arith.subf %0, %3 : vector<8x5xf32>
    %5 = math.exp %4 : vector<8x5xf32>
    %cst_1 = arith.constant dense<0.000000e+00> : vector<8xf32>
    %6 = vector.multi_reduction <add>, %5, %cst_1 [1] : vector<8x5xf32> to vector<8xf32>
    %7 = vector.shape_cast %6 : vector<8xf32> to vector<8x1xf32>
    %8 = math.log %7 : vector<8x1xf32>
    %9 = tpu.iota {dimensions = array<i32: 1>} : vector<8x5xi32>
    %c0_2 = arith.constant 0 : index
    %c0_3 = arith.constant 0 : index
    %10 = vector.load %arg2[%c0_2, %c0_3] : memref<8x1xi32, #tpu.memory_space<vmem>>, vector<8x1xi32>
    %11 = vector.broadcast %10 : vector<8x1xi32> to vector<8x5xi32>
    %12 = arith.cmpi eq, %9, %11 : vector<8x5xi32>
    %cst_4 = arith.constant 0.899999976 : f32
    %cst_5 = arith.constant 2.500000e-02 : f32
    %13 = vector.broadcast %cst_4 : f32 to vector<8x5xf32>
    %14 = vector.broadcast %cst_5 : f32 to vector<8x5xf32>
    %15 = arith.select %12, %13, %14 : vector<8x5xi1>, vector<8x5xf32>
    %16 = arith.mulf %15, %4 : vector<8x5xf32>
    %cst_6 = arith.constant dense<0.000000e+00> : vector<8xf32>
    %17 = vector.multi_reduction <add>, %16, %cst_6 [1] : vector<8x5xf32> to vector<8xf32>
    %18 = vector.shape_cast %17 : vector<8xf32> to vector<8x1xf32>
    %cst_7 = arith.constant 1.000000e+00 : f32
    %19 = vector.broadcast %cst_7 : f32 to vector<8x1xf32>
    %20 = arith.mulf %19, %8 : vector<8x1xf32>
    %21 = arith.subf %20, %18 : vector<8x1xf32>
    %c8_i32 = arith.constant 8 : i32
    %22 = arith.muli %arg0, %c8_i32 : i32
    %23 = tpu.iota {dimensions = array<i32: 0>} : vector<8x1xi32>
    %24 = vector.broadcast %22 : i32 to vector<8x1xi32>
    %25 = arith.addi %24, %23 : vector<8x1xi32>
    %c8_i32_8 = arith.constant 8 : i32
    %26 = vector.broadcast %c8_i32_8 : i32 to vector<8x1xi32>
    %27 = arith.cmpi slt, %25, %26 : vector<8x1xi32>
    %cst_9 = arith.constant 0.000000e+00 : f32
    %28 = vector.broadcast %cst_9 : f32 to vector<8x1xf32>
    %29 = arith.select %27, %21, %28 : vector<8x1xi1>, vector<8x1xf32>
    %30 = vector.shape_cast %29 : vector<8x1xf32> to vector<1x8x1xf32>
    %cst_10 = arith.constant dense<0.000000e+00> : vector<1xf32>
    %31 = vector.multi_reduction <add>, %30, %cst_10 [1, 2] : vector<1x8x1xf32> to vector<1xf32>
    %32 = vector.shape_cast %31 : vector<1xf32> to vector<1x1x1xf32>
    %33 = vector.extract %32[0, 0, 0] : f32 from vector<1x1x1xf32>
    %34 = vector.broadcast %33 : f32 to vector<1x8x128xf32>
    %c0_11 = arith.constant 0 : index
    %c0_12 = arith.constant 0 : index
    %c0_13 = arith.constant 0 : index
    %35 = vector.load %arg3[%c0_11, %c0_12, %c0_13] : memref<1x8x128xf32, #tpu.memory_space<vmem>>, vector<1x8x128xf32>
    tpu.vector_store %arg3[%c0_11, %c0_12, %c0_13], %34 {strides = array<i32>} : memref<1x8x128xf32, #tpu.memory_space<vmem>>, vector<1x8x128xf32>,
    return
  }
  func.func @transform_0(%arg0: i32) -> (i32, i32) {
    %c0_i32 = arith.constant 0 : i32
    %c0_i32_0 = arith.constant 0 : i32
    return %arg0, %c0_i32 : i32, i32
  }
  func.func @transform_1(%arg0: i32) -> (i32, i32) {
    %c0_i32 = arith.constant 0 : i32
    %c0_i32_0 = arith.constant 0 : i32
    return %arg0, %c0_i32 : i32, i32
  }
  func.func @transform_2(%arg0: i32) -> (i32, i32, i32) {
    %c0_i32 = arith.constant 0 : i32
    %c0_i32_0 = arith.constant 0 : i32
    %c0_i32_1 = arith.constant 0 : i32
    return %arg0, %c0_i32, %c0_i32_0 : i32, i32, i32
  }
}

</mosaic_0001>

<bundles_post_ra>
// kernel: tpu_custom_call.1
= control target key start
LH: loop header
LB: loop body
LE: loop exit
PB: predicated region body
PF: predicated region fallthrough
CT: control target
= control target key end

     0   :  { %vm13_vm0 = vcmask 39936   ;;  %s140_s0 = inlined_call_operand.vmem [shape: f32[8,5], index: 0, kind: input, shape index: {}]   ;;  %s141_s1 = inlined_call_operand.vmem [shape: s32[8,1], index: 1, kind: input, shape index: {}]   ;;  %s142_s2 = inlined_call_operand.hbm [shape: f32[1,8,128], index: 2, kind: output, shape index: {}]  }
   0x1   :  { %v12_v0 = vld [vmem:[%s140_s0] sm:$0xff] }
   0x2   :  { %7 = vsyncpa [#allocation3], 0  ;;  %v14_v1 = vsel %vm13_vm0, %v12_v0, -inf  ;;  %v110_v2 = vmov 0   ;;  %v27_v3 = vld [vmem:[%s141_s1] sm:$0xff]  ;;  %v25_v9 = vlaneseq  ;;  %vm45_vm2 = vcmask 7168  }
   0x3   :  { %79 = vset.pattern.permute.xlu0 %v110_v2  ;;  %v111_v12 = vmov 0.025   ;;  %s112_s0 = smov [#allocation2]   ;;  %s65_s15 = sshll.u32 %s142_s2, 4  ;;  %s66_s15 = int_to_ptr.hbm [resolvable:$true] %s65_s15 }
   0x4   :  { %15 = vmax.xlane.f32.xlu0 %v14_v1  ;;  %v26_v10 = vand.u32 127, %v25_v9  ;;  %s63_s1 = sshll.u32 %s112_s0, 4  ;;  %s64_s1 = int_to_ptr.vmem [resolvable:$true] %s63_s1 }
  0x18   :  { %29 = vperm.xlu0 %79, %v27_v3  }
  0x77   :  { %v16_v4 = vpop.xlane.xlu0 %15 }
  0x78   :  { %v17_v5 = vsub.f32 %v12_v0, %v16_v4 }
  0x7a   :  { %v18_v6 = vmul.f32 1.442695, %v17_v5 }
  0x7c   :  { %80 = vpow2.f32 %v18_v6 }
  0x82   :  { %v81_v7 = vpop.eup %80 }
  0x83   :  { %v20_v8 = vsel %vm13_vm0, %v81_v7, 0.0 }
  0x84   :  { %21 = vadd.xlane.f32.xlu1 %v20_v8 }
  0x8a   :  { %v30_v11 = vpop.permute.xlu0 %29 }
  0x8b   :  { %vm31_vm1 = vcmp.eq.s32.totalorder %v26_v10, %v30_v11 }
  0x8c   :  { %v32_v13 = vsel %vm31_vm1, 0.9, %v111_v12 }
  0x8d   :  { %v33_v14 = vmul.f32 %v32_v13, %v17_v5 }
  0x8f   :  { %v34_v15 = vsel %vm13_vm0, %v33_v14, 0.0 }
  0x90   :  { %35 = vadd.xlane.f32.xlu1 %v34_v15 }
  0xf7   :  { %v22_v16 = vpop.xlane.xlu1 %21 }
  0xf8   :  { %82 = vlog2.f32 %v22_v16 }
  0xfe   :  { %v83_v17 = vpop.eup %82 }
  0xff   :  { %v24_v18 = vmul.f32 0.6931472, %v83_v17 }
 0x103   :  { %v36_v19 = vpop.xlane.xlu1 %35 }
 0x104   :  { %v37_v20 = vsub.f32 %v24_v18, %v36_v19 }
 0x106   :  { %v46_v21 = vsel %vm45_vm2, %v37_v20, 0.0 }
 0x107   :  { %47 = vadd.xlane.f32.xlu2 %v46_v21 }
 0x17a   :  { %v48_v22 = vpop.xlane.xlu2 %47 }
 0x17b   :  { %v49_v23 = vrot.slane %v48_v22, 4 }
 0x17d   :  { %v50_v24 = vadd.f32 %v49_v23, %v48_v22 }
 0x17f   :  { %v51_v25 = vrot.slane %v50_v24, 2 }
 0x181   :  { %v52_v26 = vadd.f32 %v51_v25, %v50_v24 }
 0x183   :  { %v53_v27 = vrot.slane %v52_v26, 1 }
 0x185   :  { %v54_v28 = vadd.f32 %v53_v27, %v52_v26 }
 0x187   :  { %74 = vpush %v54_v28 }
 0x1b8   :  { %s75_s16 = spop %74 }
 0x1b9   :  { %v56_v29 = vstv %s75_s16 }
 0x1ba   :  { %57 = vst [vmem:[#allocation2] sm:$0xff] %v56_v29 }
 0x1bb   :  { %68 = dma.vmem_to_hbm [thread:$0]  %s64_s1, 128, %s66_s15, [#allocation3]  }
 0x1bc   :  { %108 = dma.done.wait [#allocation3], 128  }
 0x1bd   :  { %109 = vsyncadd [#allocation3], 4294967168 }
 0x1be   :  { %73 = vsyncpa [#allocation3], 1 }

</bundles_post_ra>
